<compile_context>
chip_gen: v7x
topology: tpu7x:2x2x1
jax: 0.10.0
libtpu: 0.0.40
codegen_flags: <defaults>
</compile_context>

<pallas_src>
import functools

import jax
import jax.numpy as jnp
from jax.experimental import pallas as pl
from jax.experimental.pallas import tpu as pltpu


def _round_up(x, m):
    return (x + m - 1) // m * m


def _rope_fused_kernel(q_ref, k_ref, cos_ref, sin_a_ref, sin_b_ref,
                       oq_ref, ok_ref, *, head_size):
    """Apply RoPE to one row-tile of query and key.

    q_ref:     (R, Hq*D)
    k_ref:     (R, Hk*D)
    cos_ref:   (R, D)  f32, gathered at the token positions
    sin_a_ref: (R, D)  f32, = concat([-sin[:, :D//2], zeros])  pairs with x[l + D//2]
    sin_b_ref: (R, D)  f32, = concat([zeros,  sin[:, D//2:]])  pairs with x[l - D//2]
    """
    half = head_size // 2
    cos = cos_ref[...]
    sin_a = sin_a_ref[...]
    sin_b = sin_b_ref[...]

    def apply(x_ref, o_ref):
        x = x_ref[...]
        w = x.shape[-1]
        n_heads = w // head_size
        dt = x.dtype
        # Broadcast the (R, D) tables across heads once per tile (lane concat).
        cos_t = jnp.concatenate([cos.astype(dt)] * n_heads, axis=-1)
        sin_a_t = jnp.concatenate([sin_a.astype(dt)] * n_heads, axis=-1)
        sin_b_t = jnp.concatenate([sin_b.astype(dt)] * n_heads, axis=-1)
        # Whole-tile lane rotations (vectorized rotate_half across all heads):
        #   x_pl[l] = x[(l + half) % w]  -> x2 on first-half lanes of each head
        #   x_mi[l] = x[(l - half) % w]  -> x1 on second-half lanes of each head
        x_pl = jnp.concatenate([x[:, half:], x[:, :half]], axis=-1)
        x_mi = jnp.concatenate([x[:, w - half:], x[:, :w - half]], axis=-1)
        # Sign + half-selection live in sin_a/sin_b (zeros kill the wrong-half and
        # wrapped lanes), so the hot path is just 3 muls + 2 adds per element.
        o_ref[...] = (x * cos_t + x_pl * sin_a_t + x_mi * sin_b_t).astype(o_ref.dtype)

    apply(q_ref, oq_ref)
    apply(k_ref, ok_ref)


def _fused_rope_2d(q2d, k2d, cos2d, sin_a2d, sin_b2d, head_size,
                   *, max_block_rows=256, vmem_budget_bytes=28 * 1024 * 1024):
    rows, wq = q2d.shape
    wk = k2d.shape[1]
    x_bytes = jnp.dtype(q2d.dtype).itemsize

    # Per-row VMEM cost: double-buffered x in/out + cos/sin tables, plus a
    # conservative allowance for in-kernel temporaries (rotated copies etc.).
    io_per_row = 2 * (2 * (wq + wk) * x_bytes + 3 * head_size * 4)
    tmp_per_row = 6 * max(wq, wk) * max(x_bytes, 4)
    per_row = io_per_row + tmp_per_row
    cap = max(8, (vmem_budget_bytes // per_row) // 8 * 8)
    block_rows = int(min(max_block_rows, cap, _round_up(rows, 8)))
    block_rows = max(8, (block_rows // 8) * 8)

    # Pad rows so the grid divides evenly (ragged-tail safe); slice back after.
    rows_p = _round_up(rows, block_rows)
    if rows_p != rows:
        pad = ((0, rows_p - rows), (0, 0))
        q2d = jnp.pad(q2d, pad)
        k2d = jnp.pad(k2d, pad)
        cos2d = jnp.pad(cos2d, pad)
        sin_a2d = jnp.pad(sin_a2d, pad)
        sin_b2d = jnp.pad(sin_b2d, pad)

    # Explicit scoped-VMEM limit: enough for our budget, safe on v5e/v6e/v7x.
    vmem_limit = int(min(max(per_row * block_rows + (8 << 20), 32 << 20), 56 << 20))

    kernel = functools.partial(_rope_fused_kernel, head_size=head_size)
    grid = (rows_p // block_rows,)

    q_out, k_out = pl.pallas_call(
        kernel,
        out_shape=(
            jax.ShapeDtypeStruct((rows_p, wq), q2d.dtype),
            jax.ShapeDtypeStruct((rows_p, wk), k2d.dtype),
        ),
        grid_spec=pltpu.PrefetchScalarGridSpec(
            num_scalar_prefetch=0,
            grid=grid,
            in_specs=[
                pl.BlockSpec((block_rows, wq), lambda i: (i, 0)),
                pl.BlockSpec((block_rows, wk), lambda i: (i, 0)),
                pl.BlockSpec((block_rows, head_size), lambda i: (i, 0)),
                pl.BlockSpec((block_rows, head_size), lambda i: (i, 0)),
                pl.BlockSpec((block_rows, head_size), lambda i: (i, 0)),
            ],
            out_specs=[
                pl.BlockSpec((block_rows, wq), lambda i: (i, 0)),
                pl.BlockSpec((block_rows, wk), lambda i: (i, 0)),
            ],
        ),
        compiler_params=pltpu.CompilerParams(
            dimension_semantics=("parallel",),
            vmem_limit_bytes=vmem_limit,
        ),
    )(q2d, k2d, cos2d, sin_a2d, sin_b2d)

    return q_out[:rows], k_out[:rows]


class HpuRotaryEmbedding:
    """JAX/Pallas port of the PyTorch HpuRotaryEmbedding (non-HPU fallback path)."""

    def __init__(self, head_size, rotary_dim, max_position_embeddings=2048,
                 base=10000, is_neox_style=None, dtype=jnp.float32):
        # The reference module multiplies full head_size activations by cos/sin of
        # width rotary_dim, so the two must match for the math to be well defined.
        assert head_size == rotary_dim, "module semantics require head_size == rotary_dim"
        self.head_size = head_size
        self.dim = rotary_dim
        self.max_position_embeddings = max_position_embeddings
        self.base = base
        self.inv_freq = 1.0 / (base ** (jnp.arange(0, rotary_dim, 2, dtype=jnp.float32)
                                        / rotary_dim))
        self._set_cos_sin_cache(max_position_embeddings)

    def _set_cos_sin_cache(self, seq_len):
        # Caches are kept in f32 always (single rounding happens inside the kernel
        # when casting to the activation dtype).
        self.max_seq_len_cached = seq_len
        t = jnp.arange(seq_len, dtype=jnp.float32)
        freqs = jnp.einsum("i,j->ij", t, self.inv_freq)
        emb = jnp.concatenate([freqs, freqs], axis=-1)
        self.cos_cached = jnp.cos(emb)
        self.sin_cached = jnp.sin(emb)
        half = self.dim // 2
        zeros = jnp.zeros_like(self.sin_cached[:, :half])
        # Sign and half-selection of rotate_half folded statically into the cache:
        self.sin_first_cached = jnp.concatenate([-self.sin_cached[:, :half], zeros], axis=-1)
        self.sin_second_cached = jnp.concatenate([zeros, self.sin_cached[:, half:]], axis=-1)

    def __call__(self, positions, query, key):
        # positions: [B, S] int32; query: [B, S, Hq*D]; key: [B, S, Hk*D]
        B, S = positions.shape
        D = self.head_size
        seq_len = key.shape[-2]
        if seq_len > self.max_seq_len_cached:
            self._set_cos_sin_cache(seq_len)

        # TODO(synk): gather cos/sin inside the kernel (scalar-prefetch positions or
        # VMEM-resident cache) to avoid the HBM round-trip of the gathered tables.
        pos = positions.reshape(-1)
        cos = self.cos_cached[pos]            # [B*S, D] f32
        sin_a = self.sin_first_cached[pos]    # [B*S, D] f32
        sin_b = self.sin_second_cached[pos]   # [B*S, D] f32

        q2d = query.reshape(B * S, -1)
        k2d = key.reshape(B * S, -1)
        q_out, k_out = _fused_rope_2d(q2d, k2d, cos, sin_a, sin_b, D)
        return q_out.reshape(query.shape), k_out.reshape(key.shape)


def _reference(rope, positions, query, key):
    """Pure-JAX reference matching apply_rotary_pos_emb semantics."""
    B, S = positions.shape
    D = rope.head_size

    def rotate_half(x):
        h = x.shape[-1] // 2
        return jnp.concatenate([-x[..., h:], x[..., :h]], axis=-1)

    cos = rope.cos_cached[positions][:, :, None, :].astype(query.dtype)  # [B,S,1,D]
    sin = rope.sin_cached[positions][:, :, None, :].astype(query.dtype)
    q4 = query.reshape(B, S, query.shape[-1] // D, D)
    k4 = key.reshape(B, S, key.shape[-1] // D, D)
    q_e = q4 * cos + rotate_half(q4) * sin
    k_e = k4 * cos + rotate_half(k4) * sin
    return q_e.reshape(query.shape), k_e.reshape(key.shape)


if __name__ == "__main__":
    B, S, D = 2, 8, 32           # batch, seq, head_size (== rotary_dim)
    n_q_heads, n_kv_heads = 4, 2
    max_pos = 64

    rng = jax.random.PRNGKey(0)
    kq, kk, kp = jax.random.split(rng, 3)
    query = jax.random.normal(kq, (B, S, n_q_heads * D), dtype=jnp.float32)
    key = jax.random.normal(kk, (B, S, n_kv_heads * D), dtype=jnp.float32)
    positions = jax.random.randint(kp, (B, S), 0, max_pos, dtype=jnp.int32)

    rope = HpuRotaryEmbedding(head_size=D, rotary_dim=D,
                              max_position_embeddings=max_pos, base=10000)

    q_out, k_out = rope(positions, query, key)
    jax.block_until_ready((q_out, k_out))

    q_ref, k_ref = _reference(rope, positions, query, key)
    assert q_out.shape == query.shape and k_out.shape == key.shape
    assert jnp.allclose(q_out, q_ref, atol=1e-5, rtol=1e-5)
    assert jnp.allclose(k_out, k_ref, atol=1e-5, rtol=1e-5)
    print("KERNEL_OK")
</pallas_src>

<mosaic_0001>
module attributes {stable_mosaic.version = 11 : i64} {
  func.func @_rope_fused_kernel(%arg0: i32, %arg1: memref<16x128xf32, #tpu.memory_space<vmem>>, %arg2: memref<16x64xf32, #tpu.memory_space<vmem>>, %arg3: memref<16x32xf32, #tpu.memory_space<vmem>>, %arg4: memref<16x32xf32, #tpu.memory_space<vmem>>, %arg5: memref<16x32xf32, #tpu.memory_space<vmem>>, %arg6: memref<16x128xf32, #tpu.memory_space<vmem>>, %arg7: memref<16x64xf32, #tpu.memory_space<vmem>>) attributes {dimension_semantics = [#tpu.dimension_semantics<parallel>], iteration_bounds = array<i64: 1>, scalar_prefetch = 0 : i64, scratch_operands = 0 : i64, tpu.core_type = #tpu.core_type<tc>, window_params = [{transform_indices = @transform_0, window_bounds = array<i64: 16, 128>}, {transform_indices = @transform_1, window_bounds = array<i64: 16, 64>}, {transform_indices = @transform_2, window_bounds = array<i64: 16, 32>}, {transform_indices = @transform_3, window_bounds = array<i64: 16, 32>}, {transform_indices = @transform_4, window_bounds = array<i64: 16, 32>}, {transform_indices = @transform_5, window_bounds = array<i64: 16, 128>}, {transform_indices = @transform_6, window_bounds = array<i64: 16, 64>}]} {
    %c0 = arith.constant 0 : index
    %c0_0 = arith.constant 0 : index
    %0 = vector.load %arg3[%c0, %c0_0] : memref<16x32xf32, #tpu.memory_space<vmem>>, vector<16x32xf32>
    %c0_1 = arith.constant 0 : index
    %c0_2 = arith.constant 0 : index
    %1 = vector.load %arg4[%c0_1, %c0_2] : memref<16x32xf32, #tpu.memory_space<vmem>>, vector<16x32xf32>
    %c0_3 = arith.constant 0 : index
    %c0_4 = arith.constant 0 : index
    %2 = vector.load %arg5[%c0_3, %c0_4] : memref<16x32xf32, #tpu.memory_space<vmem>>, vector<16x32xf32>
    %c0_5 = arith.constant 0 : index
    %c0_6 = arith.constant 0 : index
    %3 = vector.load %arg1[%c0_5, %c0_6] : memref<16x128xf32, #tpu.memory_space<vmem>>, vector<16x128xf32>
    %4 = tpu.concatenate %0, %0, %0, %0 in 1 : vector<16x32xf32>, vector<16x32xf32>, vector<16x32xf32>, vector<16x32xf32> -> vector<16x128xf32>
    %5 = tpu.concatenate %1, %1, %1, %1 in 1 : vector<16x32xf32>, vector<16x32xf32>, vector<16x32xf32>, vector<16x32xf32> -> vector<16x128xf32>
    %6 = tpu.concatenate %2, %2, %2, %2 in 1 : vector<16x32xf32>, vector<16x32xf32>, vector<16x32xf32>, vector<16x32xf32> -> vector<16x128xf32>
    %7 = vector.extract_strided_slice %3 {offsets = [0, 16], sizes = [16, 112], strides = [1, 1]} : vector<16x128xf32> to vector<16x112xf32>
    %8 = vector.extract_strided_slice %3 {offsets = [0, 0], sizes = [16, 16], strides = [1, 1]} : vector<16x128xf32> to vector<16x16xf32>
    %9 = tpu.concatenate %7, %8 in 1 : vector<16x112xf32>, vector<16x16xf32> -> vector<16x128xf32>
    %10 = vector.extract_strided_slice %3 {offsets = [0, 112], sizes = [16, 16], strides = [1, 1]} : vector<16x128xf32> to vector<16x16xf32>
    %11 = vector.extract_strided_slice %3 {offsets = [0, 0], sizes = [16, 112], strides = [1, 1]} : vector<16x128xf32> to vector<16x112xf32>
    %12 = tpu.concatenate %10, %11 in 1 : vector<16x16xf32>, vector<16x112xf32> -> vector<16x128xf32>
    %13 = arith.mulf %3, %4 : vector<16x128xf32>
    %14 = arith.mulf %9, %5 : vector<16x128xf32>
    %15 = arith.addf %13, %14 : vector<16x128xf32>
    %16 = arith.mulf %12, %6 : vector<16x128xf32>
    %17 = arith.addf %15, %16 : vector<16x128xf32>
    %c0_7 = arith.constant 0 : index
    %c0_8 = arith.constant 0 : index
    %18 = vector.load %arg6[%c0_7, %c0_8] : memref<16x128xf32, #tpu.memory_space<vmem>>, vector<16x128xf32>
    tpu.vector_store %arg6[%c0_7, %c0_8], %17 {strides = array<i32>} : memref<16x128xf32, #tpu.memory_space<vmem>>, vector<16x128xf32>,
    %c0_9 = arith.constant 0 : index
    %c0_10 = arith.constant 0 : index
    %19 = vector.load %arg2[%c0_9, %c0_10] : memref<16x64xf32, #tpu.memory_space<vmem>>, vector<16x64xf32>
    %20 = tpu.concatenate %0, %0 in 1 : vector<16x32xf32>, vector<16x32xf32> -> vector<16x64xf32>
    %21 = tpu.concatenate %1, %1 in 1 : vector<16x32xf32>, vector<16x32xf32> -> vector<16x64xf32>
    %22 = tpu.concatenate %2, %2 in 1 : vector<16x32xf32>, vector<16x32xf32> -> vector<16x64xf32>
    %23 = vector.extract_strided_slice %19 {offsets = [0, 16], sizes = [16, 48], strides = [1, 1]} : vector<16x64xf32> to vector<16x48xf32>
    %24 = vector.extract_strided_slice %19 {offsets = [0, 0], sizes = [16, 16], strides = [1, 1]} : vector<16x64xf32> to vector<16x16xf32>
    %25 = tpu.concatenate %23, %24 in 1 : vector<16x48xf32>, vector<16x16xf32> -> vector<16x64xf32>
    %26 = vector.extract_strided_slice %19 {offsets = [0, 48], sizes = [16, 16], strides = [1, 1]} : vector<16x64xf32> to vector<16x16xf32>
    %27 = vector.extract_strided_slice %19 {offsets = [0, 0], sizes = [16, 48], strides = [1, 1]} : vector<16x64xf32> to vector<16x48xf32>
    %28 = tpu.concatenate %26, %27 in 1 : vector<16x16xf32>, vector<16x48xf32> -> vector<16x64xf32>
    %29 = arith.mulf %19, %20 : vector<16x64xf32>
    %30 = arith.mulf %25, %21 : vector<16x64xf32>
    %31 = arith.addf %29, %30 : vector<16x64xf32>
    %32 = arith.mulf %28, %22 : vector<16x64xf32>
    %33 = arith.addf %31, %32 : vector<16x64xf32>
    %c0_11 = arith.constant 0 : index
    %c0_12 = arith.constant 0 : index
    %34 = vector.load %arg7[%c0_11, %c0_12] : memref<16x64xf32, #tpu.memory_space<vmem>>, vector<16x64xf32>
    tpu.vector_store %arg7[%c0_11, %c0_12], %33 {strides = array<i32>} : memref<16x64xf32, #tpu.memory_space<vmem>>, vector<16x64xf32>,
    return
  }
  func.func @transform_0(%arg0: i32) -> (i32, i32) {
    %c0_i32 = arith.constant 0 : i32
    %c0_i32_0 = arith.constant 0 : i32
    return %arg0, %c0_i32 : i32, i32
  }
  func.func @transform_1(%arg0: i32) -> (i32, i32) {
    %c0_i32 = arith.constant 0 : i32
    %c0_i32_0 = arith.constant 0 : i32
    return %arg0, %c0_i32 : i32, i32
  }
  func.func @transform_2(%arg0: i32) -> (i32, i32) {
    %c0_i32 = arith.constant 0 : i32
    %c0_i32_0 = arith.constant 0 : i32
    return %arg0, %c0_i32 : i32, i32
  }
  func.func @transform_3(%arg0: i32) -> (i32, i32) {
    %c0_i32 = arith.constant 0 : i32
    %c0_i32_0 = arith.constant 0 : i32
    return %arg0, %c0_i32 : i32, i32
  }
  func.func @transform_4(%arg0: i32) -> (i32, i32) {
    %c0_i32 = arith.constant 0 : i32
    %c0_i32_0 = arith.constant 0 : i32
    return %arg0, %c0_i32 : i32, i32
  }
  func.func @transform_5(%arg0: i32) -> (i32, i32) {
    %c0_i32 = arith.constant 0 : i32
    %c0_i32_0 = arith.constant 0 : i32
    return %arg0, %c0_i32 : i32, i32
  }
  func.func @transform_6(%arg0: i32) -> (i32, i32) {
    %c0_i32 = arith.constant 0 : i32
    %c0_i32_0 = arith.constant 0 : i32
    return %arg0, %c0_i32 : i32, i32
  }
}

</mosaic_0001>

<bundles_post_ra>
// kernel: tpu_custom_call.1
= control target key start
LH: loop header
LB: loop body
LE: loop exit
PB: predicated region body
PF: predicated region fallthrough
CT: control target
= control target key end

     0   :  { %12 = vsyncpa [#allocation3], 0  ;;  %s720_s0 = inlined_call_operand.hbm [shape: f32[16,128], index: 0, kind: input, shape index: {}]   ;;  %s721_s1 = inlined_call_operand.hbm [shape: f32[16,64], index: 1, kind: input, shape index: {}]   ;;  %s722_s2 = inlined_call_operand.hbm [shape: f32[16,32], index: 2, kind: input, shape index: {}]   ;;  %s723_s3 = inlined_call_operand.hbm [shape: f32[16,32], index: 3, kind: input, shape index: {}]   ;;  %s724_s4 = inlined_call_operand.hbm [shape: f32[16,32], index: 4, kind: input, shape index: {}]   ;;  %s725_s5 = inlined_call_operand.hbm [shape: f32[16,128], index: 5, kind: output, shape index: {0}]   ;;  %s726_s6 = inlined_call_operand.hbm [shape: f32[16,64], index: 6, kind: output, shape index: {1}]  }
   0x1   :  { %13 = vsyncpa [#allocation6], 0 }
   0x2   :  { %14 = vsyncpa [#allocation9], 0 }
   0x3   :  { %15 = vsyncpa [#allocation4], 0 }
   0x4   :  { %16 = vsyncpa [#allocation13], 0  ;;  %s468_s21 = smov [#allocation5]   ;;  %s469_s23 = smov [#allocation8]  }
   0x5   :  { %s34_s22 = sshll.u32 %s468_s21, 4  ;;  %s58_s24 = sshll.u32 %s469_s23, 4  ;;  %s35_s22 = int_to_ptr.vmem [resolvable:$true] %s34_s22  ;;  %s519_s24 = int_to_ptr.vmem [resolvable:$true] %s58_s24 }
   0x6   :  { %s304_s27 = scalar_lea.hbm %s721_s1, 256 }
   0x7   :  { %p305_p0 = scmp.ne.s32.totalorder %s721_s1, %s304_s27  ;;  %p308_p1 = scmp.lt.u32.totalorder %s304_s27, %s721_s1 }
   0x9   :  { %p310_p2 = pnand %p308_p1, %p305_p0 }
   0xb   :  { %313 = shalt.err (!%p310_p2)
}
   0xc   :  { %s314_s8 = scalar_lea.vmem %s35_s22, 256  ;;  %p319_p4 = scmp.lt.s32.totalorder %s35_s22, %s35_s22 }
   0xd   :  { %p315_p3 = scmp.ne.s32.totalorder %s35_s22, %s314_s8  ;;  %p320_p5 = scmp.lt.s32.totalorder %s314_s8, %s314_s8 }
   0xf   :  { %p321_p6 = por %p320_p5, %p319_p4 }
  0x11   :  { %p322_p7 = pnand %p321_p6, %p315_p3 }
  0x13   :  { %325 = shalt.err (!%p322_p7)
}
  0x14   :  { %s470_s9 = smov 128   ;;  %s471_s10 = smov 8  }
  0x15   :  { %40 = dma.hbm_to_vmem [thread:$0]  %s721_s1, 256, %s35_s22, [#allocation6], %s470_s9, %s470_s9, %s471_s10  }
  0x16   :  { %s326_s15 = scalar_lea.hbm %s723_s3, 256 }
  0x17   :  { %p327_p8 = scmp.ne.s32.totalorder %s723_s3, %s326_s15  ;;  %p330_p9 = scmp.lt.u32.totalorder %s326_s15, %s723_s3 }
  0x19   :  { %p332_p10 = pnand %p330_p9, %p327_p8 }
  0x1b   :  { %335 = shalt.err (!%p332_p10)
}
  0x1c   :  { %s336_s20 = scalar_lea.vmem %s519_s24, 256  ;;  %p341_p12 = scmp.lt.s32.totalorder %s519_s24, %s519_s24 }
  0x1d   :  { %p337_p11 = scmp.ne.s32.totalorder %s519_s24, %s336_s20  ;;  %p342_p13 = scmp.lt.s32.totalorder %s336_s20, %s336_s20 }
  0x1f   :  { %p343_p0 = por %p342_p13, %p341_p12 }
  0x21   :  { %p344_p1 = pnand %p343_p0, %p337_p11 }
  0x23   :  { %347 = shalt.err (!%p344_p1)
}
  0x24   :  { %64 = dma.hbm_to_vmem [thread:$0]  %s723_s3, 256, %s519_s24, [#allocation9], %s470_s9, %s470_s9, %s471_s10  }
  0x25   :  { %s472_s22 = smov [#allocation2]   ;;  %s473_s25 = smov [#allocation7]  }
  0x26   :  { %s22_s23 = sshll.u32 %s472_s22, 4  ;;  %s46_s26 = sshll.u32 %s473_s25, 4  ;;  %s23_s23 = int_to_ptr.vmem [resolvable:$true] %s22_s23  ;;  %s556_s26 = int_to_ptr.vmem [resolvable:$true] %s46_s26 }
  0x27   :  { %s348_s29 = scalar_lea.hbm %s720_s0, 256 }
  0x28   :  { %p349_p2 = scmp.ne.s32.totalorder %s720_s0, %s348_s29  ;;  %p352_p3 = scmp.lt.u32.totalorder %s348_s29, %s720_s0 }
  0x2a   :  { %p354_p4 = pnand %p352_p3, %p349_p2 }
  0x2c   :  { %357 = shalt.err (!%p354_p4)
}
  0x2d   :  { %s358_s3 = scalar_lea.vmem %s23_s23, 256  ;;  %p363_p6 = scmp.lt.s32.totalorder %s23_s23, %s23_s23 }
  0x2e   :  { %p359_p5 = scmp.ne.s32.totalorder %s23_s23, %s358_s3  ;;  %p364_p7 = scmp.lt.s32.totalorder %s358_s3, %s358_s3 }
  0x30   :  { %p365_p8 = por %p364_p7, %p363_p6 }
  0x32   :  { %p366_p9 = pnand %p365_p8, %p359_p5 }
  0x34   :  { %369 = shalt.err (!%p366_p9)
}
  0x35   :  { %28 = dma.hbm_to_vmem [thread:$0]  %s720_s0, 256, %s23_s23, [#allocation3], %s470_s9, %s470_s9, %s471_s10  }
  0x36   :  { %s370_s15 = scalar_lea.hbm %s722_s2, 256 }
  0x37   :  { %p371_p10 = scmp.ne.s32.totalorder %s722_s2, %s370_s15  ;;  %p374_p11 = scmp.lt.u32.totalorder %s370_s15, %s722_s2 }
  0x39   :  { %p376_p12 = pnand %p374_p11, %p371_p10 }
  0x3b   :  { %379 = shalt.err (!%p376_p12)
}
  0x3c   :  { %s380_s20 = scalar_lea.vmem %s556_s26, 256  ;;  %p385_p0 = scmp.lt.s32.totalorder %s556_s26, %s556_s26 }
  0x3d   :  { %p381_p13 = scmp.ne.s32.totalorder %s556_s26, %s380_s20  ;;  %p386_p1 = scmp.lt.s32.totalorder %s380_s20, %s380_s20 }
  0x3f   :  { %p387_p2 = por %p386_p1, %p385_p0 }
  0x41   :  { %p388_p3 = pnand %p387_p2, %p381_p13 }
  0x43   :  { %391 = shalt.err (!%p388_p3)
}
  0x44   :  { %52 = dma.hbm_to_vmem [thread:$0]  %s722_s2, 256, %s556_s26, [#allocation6], %s470_s9, %s470_s9, %s471_s10  }
  0x45   :  { %s474_s21 = smov [#allocation10]   ;;  %s392_s27 = scalar_lea.hbm %s724_s4, 256 }
  0x46   :  { %s70_s22 = sshll.u32 %s474_s21, 4  ;;  %p393_p4 = scmp.ne.s32.totalorder %s724_s4, %s392_s27  ;;  %s71_s22 = int_to_ptr.vmem [resolvable:$true] %s70_s22 }
  0x47   :  { %p396_p5 = scmp.lt.u32.totalorder %s392_s27, %s724_s4 }
  0x49   :  { %p398_p6 = pnand %p396_p5, %p393_p4 }
  0x4b   :  { %401 = shalt.err (!%p398_p6)
}
  0x4c   :  { %s402_s8 = scalar_lea.vmem %s71_s22, 256  ;;  %p407_p8 = scmp.lt.s32.totalorder %s71_s22, %s71_s22 }
  0x4d   :  { %p403_p7 = scmp.ne.s32.totalorder %s71_s22, %s402_s8  ;;  %p408_p9 = scmp.lt.s32.totalorder %s402_s8, %s402_s8 }
  0x4f   :  { %p409_p10 = por %p408_p9, %p407_p8 }
  0x51   :  { %p410_p11 = pnand %p409_p10, %p403_p7 }
  0x53   :  { %413 = shalt.err (!%p410_p11)
}
  0x54   :  { %76 = dma.hbm_to_vmem [thread:$0]  %s724_s4, 256, %s71_s22, [#allocation9], %s470_s9, %s470_s9, %s471_s10  }
  0x55   :  { %458 = dma.done.wait [#allocation3], 256  }
  0x56   :  { %459 = vsyncadd [#allocation3], 4294967040 }
  0x57   :  { %460 = dma.done.wait [#allocation6], 512  }
  0x58   :  { %461 = vsyncadd [#allocation6], 4294966784 }
  0x59   :  { %462 = dma.done.wait [#allocation9], 512  }
  0x5a   :  { %463 = vsyncadd [#allocation9], 4294966784  ;;  %v608_v0 = vld [vmem:[#allocation8] sm:$0xff]  ;;  %v610_v1 = vld [vmem:[#allocation7] sm:$0xff]  ;;  %s475_s11 = smov 32   ;;  %s476_s4 = smov 64  }
  0x5b   :  { %131 = vrot.lane.b32.xlu1 %v608_v0, %s475_s11  ;;  %102 = vrot.lane.b32.xlu0 %v610_v1, %s475_s11  ;;  %v614_v2 = vld [vmem:[#allocation8 + $0x8] sm:$0xff]  ;;  %v616_v3 = vld [vmem:[#allocation7 + $0x8] sm:$0xff]  ;;  %s477_s3 = smov 96   ;;  %v630_v5 = vld [vmem:[#allocation10] sm:$0xff]  ;;  %s478_s24 = smov 112   ;;  %vm120_vm0 = vcmask 261120  }
  0x5c   :  { %v628_v4 = vld [vmem:[#allocation10 + $0x8] sm:$0xff]  ;;  %v634_v6 = vld [vmem:[#allocation5 + $0x8] sm:$0xff]  ;;  %v208_v7 = vld [vmem:[#allocation5] sm:$0xff]  ;;  %s479_s12 = smov 48   ;;  %s480_s13 = smov 80   ;;  %vm224_vm1 = vcmask 392192  }
  0x5d   :  { %v640_v8 = vld [vmem:[#allocation2 + $0x8] sm:$0xff]  ;;  %v642_v9 = vld [vmem:[#allocation2] sm:$0xff]  ;;  %s481_s14 = smov 16   ;;  %vm123_vm2 = vcmask 523264   ;;  %vm126_vm3 = vcmask 785408   ;;  %vm195_vm4 = vcmask 130048  }
  0x5e   :  { %s482_s15 = smov [#allocation12]   ;;  %s483_s17 = smov [#allocation11]  }
  0x5f   :  { %133 = vrot.lane.b32.xlu1 %v614_v2, %s475_s11  ;;  %104 = vrot.lane.b32.xlu0 %v616_v3, %s475_s11  ;;  %s270_s16 = sshll.u32 %s482_s15, 4  ;;  %s258_s18 = sshll.u32 %s483_s17, 4  ;;  %s271_s16 = int_to_ptr.vmem [resolvable:$true] %s270_s16  ;;  %s683_s18 = int_to_ptr.vmem [resolvable:$true] %s258_s18 }
  0x60   :  { %s414_s19 = scalar_lea.vmem %s271_s16, 256  ;;  %p419_p13 = scmp.lt.s32.totalorder %s271_s16, %s271_s16 }
  0x61   :  { %p415_p12 = scmp.ne.s32.totalorder %s271_s16, %s414_s19  ;;  %p420_p0 = scmp.lt.s32.totalorder %s414_s19, %s414_s19 }
  0x63   :  { %110 = vrot.lane.b32.xlu1 %v616_v3, %s476_s4  ;;  %108 = vrot.lane.b32.xlu0 %v610_v1, %s476_s4  ;;  %p421_p1 = por %p420_p0, %p419_p13 }
  0x65   :  { %p422_p2 = pnand %p421_p1, %p415_p12 }
  0x67   :  { %139 = vrot.lane.b32.xlu1 %v614_v2, %s476_s4  ;;  %137 = vrot.lane.b32.xlu0 %v608_v0, %s476_s4 }
  0x6b   :  { %116 = vrot.lane.b32.xlu1 %v616_v3, %s477_s3  ;;  %114 = vrot.lane.b32.xlu0 %v610_v1, %s477_s3 }
  0x6f   :  { %145 = vrot.lane.b32.xlu1 %v614_v2, %s477_s3  ;;  %143 = vrot.lane.b32.xlu0 %v608_v0, %s477_s3 }
  0x73   :  { %159 = vrot.lane.b32.xlu1 %v628_v4, %s475_s11  ;;  %157 = vrot.lane.b32.xlu0 %v630_v5, %s475_s11 }
  0x77   :  { %214 = vrot.lane.b32.xlu1 %v634_v6, %s478_s24  ;;  %212 = vrot.lane.b32.xlu0 %v208_v7, %s478_s24 }
  0x7b   :  { %220 = vrot.lane.b32.xlu1 %v634_v6, %s479_s12  ;;  %218 = vrot.lane.b32.xlu0 %v208_v7, %s479_s12 }
  0x7f   :  { %165 = vrot.lane.b32.xlu1 %v628_v4, %s476_s4  ;;  %163 = vrot.lane.b32.xlu0 %v630_v5, %s476_s4 }
  0x83   :  { %185 = vrot.lane.b32.xlu1 %v640_v8, %s478_s24  ;;  %183 = vrot.lane.b32.xlu0 %v642_v9, %s478_s24 }
  0x87   :  { %171 = vrot.lane.b32.xlu1 %v628_v4, %s477_s3  ;;  %169 = vrot.lane.b32.xlu0 %v630_v5, %s477_s3 }
  0x8b   :  { %229 = vrot.lane.b32.xlu1 %v634_v6, %s480_s13  ;;  %227 = vrot.lane.b32.xlu0 %v208_v7, %s480_s13 }
  0x8f   :  { %235 = vrot.lane.b32.xlu1 %v634_v6, %s481_s14  ;;  %233 = vrot.lane.b32.xlu0 %v208_v7, %s481_s14 }
  0x93   :  { %191 = vrot.lane.b32.xlu1 %v640_v8, %s481_s14  ;;  %189 = vrot.lane.b32.xlu0 %v642_v9, %s481_s14 }
  0xcd   :  { %v132_v10 = vpop.permute.xlu1 %131  ;;  %v103_v11 = vpop.permute.xlu0 %102 }
  0xce   :  { %v121_v34 = vsel %vm120_vm0, %v610_v1, %v103_v11  ;;  %v149_v40 = vsel %vm120_vm0, %v608_v0, %v132_v10 }
  0xcf   :  { %v241_v41 = vmul.f32 %v208_v7, %v121_v34 }
  0xd1   :  { %v134_v12 = vpop.permute.xlu1 %133  ;;  %v105_v13 = vpop.permute.xlu0 %104 }
  0xd2   :  { %v122_v35 = vsel %vm120_vm0, %v616_v3, %v105_v13  ;;  %v150_v42 = vsel %vm120_vm0, %v614_v2, %v134_v12 }
  0xd3   :  { %v242_v43 = vmul.f32 %v634_v6, %v122_v35 }
  0xd5   :  { %v111_v14 = vpop.permute.xlu1 %110  ;;  %v109_v15 = vpop.permute.xlu0 %108 }
  0xd6   :  { %v125_v44 = vsel %vm123_vm2, %v122_v35, %v111_v14  ;;  %v124_v45 = vsel %vm123_vm2, %v121_v34, %v109_v15 }
  0xd9   :  { %v140_v16 = vpop.permute.xlu1 %139  ;;  %v138_v17 = vpop.permute.xlu0 %137 }
  0xda   :  { %v152_v48 = vsel %vm123_vm2, %v150_v42, %v140_v16  ;;  %v151_v49 = vsel %vm123_vm2, %v149_v40, %v138_v17 }
  0xdd   :  { %v117_v18 = vpop.permute.xlu1 %116  ;;  %v115_v19 = vpop.permute.xlu0 %114 }
  0xde   :  { %v128_v50 = vsel %vm126_vm3, %v125_v44, %v117_v18  ;;  %v127_v51 = vsel %vm126_vm3, %v124_v45, %v115_v19 }
  0xdf   :  { %v197_v2 = vmul.f32 %v128_v50, %v640_v8  ;;  %v196_v3 = vmul.f32 %v127_v51, %v642_v9 }
  0xe1   :  { %v146_v20 = vpop.permute.xlu1 %145  ;;  %v144_v21 = vpop.permute.xlu0 %143 }
  0xe2   :  { %v154_v54 = vsel %vm126_vm3, %v152_v48, %v146_v20  ;;  %v153_v55 = vsel %vm126_vm3, %v151_v49, %v144_v21 }
  0xe5   :  { %v160_v22 = vpop.permute.xlu1 %159  ;;  %v158_v23 = vpop.permute.xlu0 %157 }
  0xe6   :  { %v176_v52 = vsel %vm120_vm0, %v628_v4, %v160_v22  ;;  %v175_v53 = vsel %vm120_vm0, %v630_v5, %v158_v23 }
  0xe9   :  { %v215_v24 = vpop.permute.xlu1 %214  ;;  %v213_v25 = vpop.permute.xlu0 %212 }
  0xed   :  { %v221_v26 = vpop.permute.xlu1 %220  ;;  %v219_v27 = vpop.permute.xlu0 %218 }
  0xee   :  { %v226_v36 = vsel %vm224_vm1, %v215_v24, %v221_v26  ;;  %v225_v37 = vsel %vm224_vm1, %v213_v25, %v219_v27 }
  0xef   :  { %v244_v46 = vmul.f32 %v226_v36, %v150_v42  ;;  %v243_v47 = vmul.f32 %v225_v37, %v149_v40 }
  0xf1   :  { %v166_v28 = vpop.permute.xlu1 %165  ;;  %v164_v29 = vpop.permute.xlu0 %163  ;;  %v246_v62 = vadd.f32 %v244_v46, %v242_v43  ;;  %v245_v63 = vadd.f32 %v243_v47, %v241_v41 }
  0xf2   :  { %v178_v4 = vsel %vm123_vm2, %v176_v52, %v166_v28  ;;  %v177_v5 = vsel %vm123_vm2, %v175_v53, %v164_v29 }
  0xf5   :  { %v186_v30 = vpop.permute.xlu1 %185  ;;  %v184_v31 = vpop.permute.xlu0 %183 }
  0xf6   :  { %v199_v58 = vmul.f32 %v186_v30, %v154_v54  ;;  %v198_v59 = vmul.f32 %v184_v31, %v153_v55 }
  0xf8   :  { %v201_v14 = vadd.f32 %v199_v58, %v197_v2  ;;  %v200_v15 = vadd.f32 %v198_v59, %v196_v3 }
  0xf9   :  { %v172_v32 = vpop.permute.xlu1 %171  ;;  %v170_v33 = vpop.permute.xlu0 %169 }
  0xfa   :  { %v180_v10 = vsel %vm126_vm3, %v178_v4, %v172_v32  ;;  %v179_v12 = vsel %vm126_vm3, %v177_v5, %v170_v33 }
  0xfd   :  { %v230_v38 = vpop.permute.xlu1 %229  ;;  %v228_v39 = vpop.permute.xlu0 %227 }
 0x101   :  { %v236_v56 = vpop.permute.xlu1 %235  ;;  %v234_v57 = vpop.permute.xlu0 %233 }
 0x102   :  { %v240_v60 = vsel %vm195_vm4, %v230_v38, %v236_v56  ;;  %v239_v61 = vsel %vm195_vm4, %v228_v39, %v234_v57 }
 0x103   :  { %v248_v0 = vmul.f32 %v240_v60, %v176_v52  ;;  %v247_v1 = vmul.f32 %v239_v61, %v175_v53 }
 0x105   :  { %v250_v6 = vadd.f32 %v248_v0, %v246_v62  ;;  %v249_v7 = vadd.f32 %v247_v1, %v245_v63  ;;  %v192_v11 = vpop.permute.xlu1 %191  ;;  %v190_v13 = vpop.permute.xlu0 %189 }
 0x106   :  { %v203_v8 = vmul.f32 %v192_v11, %v180_v10  ;;  %v202_v16 = vmul.f32 %v190_v13, %v179_v12 }
 0x107   :  { %252 = vst.msk [vmem:[#allocation12 + $0x8] sm:$0xff] %vm123_vm2, %v250_v6  ;;  %251 = vst.msk [vmem:[#allocation12] sm:$0xff] %vm123_vm2, %v249_v7 }
 0x108   :  { %v205_v9 = vadd.f32 %v203_v8, %v201_v14  ;;  %v204_v17 = vadd.f32 %v202_v16, %v200_v15 }
 0x109   :  { %425 = shalt.err (!%p422_p2)
}
 0x10a   :  { %s426_s1 = scalar_lea.hbm %s726_s6, 256 }
 0x10b   :  { %p427_p3 = scmp.ne.s32.totalorder %s726_s6, %s426_s1  ;;  %p430_p4 = scmp.lt.u32.totalorder %s426_s1, %s726_s6 }
 0x10d   :  { %p432_p5 = pnand %p430_p4, %p427_p3 }
 0x10f   :  { %435 = shalt.err (!%p432_p5)
}
 0x110   :  { %276 = dma.vmem_to_hbm [thread:$0]  %s271_s16, 256, %s726_s6, [#allocation13], %s470_s9, %s470_s9, %s471_s10   ;;  %207 = vst [vmem:[#allocation11 + $0x8] sm:$0xff] %v205_v9  ;;  %206 = vst [vmem:[#allocation11] sm:$0xff] %v204_v17 }
 0x111   :  { %s436_s29 = scalar_lea.vmem %s683_s18, 256  ;;  %p441_p7 = scmp.lt.s32.totalorder %s683_s18, %s683_s18 }
 0x112   :  { %p437_p6 = scmp.ne.s32.totalorder %s683_s18, %s436_s29  ;;  %p442_p8 = scmp.lt.s32.totalorder %s436_s29, %s436_s29 }
 0x114   :  { %p443_p9 = por %p442_p8, %p441_p7 }
 0x116   :  { %p444_p10 = pnand %p443_p9, %p437_p6 }
 0x118   :  { %447 = shalt.err (!%p444_p10)
}
 0x119   :  { %s448_s8 = scalar_lea.hbm %s725_s5, 256 }
 0x11a   :  { %p449_p11 = scmp.ne.s32.totalorder %s725_s5, %s448_s8  ;;  %p452_p12 = scmp.lt.u32.totalorder %s448_s8, %s725_s5 }
 0x11c   :  { %p454_p13 = pnand %p452_p12, %p449_p11 }
 0x11e   :  { %457 = shalt.err (!%p454_p13)
}
 0x11f   :  { %264 = dma.vmem_to_hbm [thread:$0]  %s683_s18, 256, %s725_s5, [#allocation4], %s470_s9, %s470_s9, %s471_s10  }
 0x120   :  { %464 = dma.done.wait [#allocation4], 256  }
 0x121   :  { %465 = vsyncadd [#allocation4], 4294967040 }
 0x122   :  { %466 = dma.done.wait [#allocation13], 256  }
 0x123   :  { %467 = vsyncadd [#allocation13], 4294967040 }
 0x124   :  { %283 = vsyncpa [#allocation3], 1 }
 0x125   :  { %284 = vsyncpa [#allocation6], 1 }
 0x126   :  { %285 = vsyncpa [#allocation9], 1 }
 0x127   :  { %286 = vsyncpa [#allocation4], 1 }
 0x128   :  { %287 = vsyncpa [#allocation13], 1 }

</bundles_post_ra>
